<compile_context>
chip_gen: v7x
topology: tpu7x:2x2x1
jax: 0.10.0
libtpu: 0.0.40
codegen_flags: <defaults>
</compile_context>

<pallas_src>
import functools

import jax
import jax.numpy as jnp
from jax.experimental import pallas as pl
from jax.experimental.pallas import tpu as pltpu


def _round_up(x, m):
    return ((x + m - 1) // m) * m


def _fused_cnn_kernel(emb_ref, wpack_ref, bpack_ref, mask_ref, wf_ref, bf_ref,
                      out_ref, *, fs_max, s_im):
    # emb_ref   : (Bt, S_pad, E)        bf16  (zero-padded rows at the end)
    # wpack_ref : (fs_max*E, Npad)      bf16  im2col-packed conv taps
    # bpack_ref : (1, Npad)             f32   packed conv biases (0 in padding)
    # mask_ref  : (s_im, Npad)          f32   1.0 where (t, filter) is a valid
    #                                         conv output position, else 0.0
    # wf_ref    : (Npad, Opad)          bf16  folded fc1@fc2 (zero-padded)
    # bf_ref    : (1, Opad)             f32
    # out_ref   : (Bt, Opad)            f32   lane-dense output
    bt, _, e = emb_ref.shape
    emb = emb_ref[...]                                          # bf16

    # im2col: window of fs_max consecutive rows at every position t in [0, s_im)
    # (fs_max static slices + lane concat; rides the XLU, stays full-width).
    xcol = jnp.concatenate([emb[:, k:k + s_im, :] for k in range(fs_max)],
                           axis=-1)                             # (Bt, s_im, fs_max*E)
    k_dim = fs_max * e

    # Single MXU matmul covering every tap of every filter size (f32 accum).
    p = jnp.dot(xcol.reshape(bt * s_im, k_dim), wpack_ref[...],
                preferred_element_type=jnp.float32)             # (Bt*s_im, Npad)
    npad = p.shape[-1]
    p = p.reshape(bt, s_im, npad) + bpack_ref[...].reshape(1, 1, npad)

    # ReLU, then zero out positions that are not real conv outputs for their
    # filter size. Since ReLU outputs are >= 0, masking to 0 keeps the
    # max-over-time exact.
    p = jnp.maximum(p, 0.0) * mask_ref[...].reshape(1, s_im, npad)
    pooled = jnp.max(p, axis=1)                                 # (Bt, Npad)

    # nn.Dropout in eval mode is the identity; fc1 and fc2 are folded offline
    # (no nonlinearity between them in the reference module).
    out_ref[...] = (jnp.dot(pooled.astype(wf_ref.dtype), wf_ref[...],
                            preferred_element_type=jnp.float32)
                    + bf_ref[...])


def _choose_block_b(batch, s_im, s_pad, e, npad, fs_max,
                    budget_bytes=24 << 20):
    """Pick the batch tile from a VMEM budget (~24 MiB: safe under v7x's 64 MiB
    physical VMEM, big enough to sit near the HBM roofline on v5e/v6e)."""
    per_row = (2 * s_pad * e * 2          # double-buffered emb tile (bf16)
               + s_im * fs_max * e * 2    # im2col activation (bf16)
               + 2 * s_im * npad * 4)     # conv output + masked copy (f32)
    bt = (budget_bytes // max(per_row, 1)) // 8 * 8
    bt = max(8, min(bt, 1024))
    b8 = _round_up(batch, 8)
    if b8 >= 16:
        # Keep >= 2 grid steps: megacore sharding on v7x and DMA/compute overlap.
        bt = min(bt, _round_up((b8 + 1) // 2, 8))
    return min(bt, b8)


def cnn_forward(params, text):
    """Full forward pass. The embedding gather stays in XLA (bf16 table, half
    the bytes); everything else runs in a single fused Pallas kernel."""
    filter_sizes = params["filter_sizes"]
    fs_max = max(filter_sizes)
    n_filters = params["fc1_w"].shape[1]
    ncat = params["fc1_w"].shape[0]
    out_dim = params["fc2_w"].shape[1]

    # TODO(synk): fuse the gather in-kernel (scalar-prefetched token ids +
    # per-row DMA from an HBM-resident table) to remove the remaining
    # (B, S, E) HBM round trip of the gathered activation.
    emb = jnp.take(params["embedding"], text, axis=0)           # (B, S, E) bf16
    batch, seq, e = emb.shape
    assert seq >= fs_max, "seq_len must be >= max(filter_sizes)"

    wpack = params["conv_wpack"]                                # (fs_max*E, Npad) bf16
    bpack = params["conv_bpack"]                                # (1, Npad) f32
    npad = wpack.shape[1]
    opad = _round_up(out_dim, 128)

    # Fold fc1 @ fc2 (exact: no activation between them in the reference) and
    # zero-pad to lane-dense shapes.
    w12 = params["fc1_w"] @ params["fc2_w"]                     # (ncat, out_dim) f32
    b12 = params["fc1_b"] @ params["fc2_w"] + params["fc2_b"]   # (1, out_dim)  f32
    wfold = jnp.pad(w12, ((0, npad - ncat), (0, opad - out_dim))).astype(jnp.bfloat16)
    bfold = jnp.pad(b12, ((0, 0), (0, opad - out_dim))).astype(jnp.float32)

    # im2col geometry: s_im output positions (seq rounded to a sublane multiple),
    # embedding padded with zero rows so every fs_max-row window exists.
    s_im = _round_up(seq, 8)
    s_pad = _round_up(s_im + fs_max - 1, 8)

    # Validity mask: position t is a real conv output for filter size fs iff
    # t <= seq - fs; padded columns are always invalid.
    t = jnp.arange(s_im)[:, None]
    cols = [jnp.broadcast_to(t <= seq - fs, (s_im, n_filters))
            for fs in filter_sizes]
    mask = jnp.concatenate(cols, axis=1).astype(jnp.float32)
    mask = jnp.pad(mask, ((0, 0), (0, npad - ncat)))            # (s_im, Npad)

    bt = _choose_block_b(batch, s_im, s_pad, e, npad, fs_max)
    bpad = _round_up(batch, bt)
    emb = jnp.pad(emb, ((0, bpad - batch), (0, s_pad - seq), (0, 0)))

    kernel = functools.partial(_fused_cnn_kernel, fs_max=fs_max, s_im=s_im)
    out = pl.pallas_call(
        kernel,
        out_shape=jax.ShapeDtypeStruct((bpad, opad), jnp.float32),
        grid_spec=pltpu.PrefetchScalarGridSpec(
            num_scalar_prefetch=0,
            grid=(bpad // bt,),
            in_specs=[
                pl.BlockSpec((bt, s_pad, e), lambda i: (i, 0, 0)),
                # Grid-invariant weights (constant index maps).
                # TODO(synk): pipeline_mode=pl.Buffered(1) on these to reclaim
                # the second buffer copy inside v7x's tighter VMEM budget.
                pl.BlockSpec((fs_max * e, npad), lambda i: (0, 0)),
                pl.BlockSpec((1, npad), lambda i: (0, 0)),
                pl.BlockSpec((s_im, npad), lambda i: (0, 0)),
                pl.BlockSpec((npad, opad), lambda i: (0, 0)),
                pl.BlockSpec((1, opad), lambda i: (0, 0)),
            ],
            out_specs=pl.BlockSpec((bt, opad), lambda i: (i, 0)),
        ),
        compiler_params=pltpu.CompilerParams(
            dimension_semantics=("parallel",),      # shards batch across v7x TCs
            vmem_limit_bytes=48 * 1024 * 1024,      # > v5e/v6e defaults, < v7x 64 MiB
        ),
    )(emb, wpack, bpack, mask, wfold, bfold)
    return out[:batch, :out_dim]


def _pack_conv_params(convs, filter_sizes, embedding_dim, n_filters):
    """im2col weight packing: each filter size owns a column group of an
    (fs_max*E, Npad) matrix; taps beyond its own length are zero rows and the
    columns are zero-padded to a multiple of 128 lanes."""
    fs_max = max(filter_sizes)
    ncat = len(filter_sizes) * n_filters
    npad = _round_up(ncat, 128)
    wpack = jnp.zeros((fs_max * embedding_dim, npad), jnp.float32)
    bpack = jnp.zeros((1, npad), jnp.float32)
    for gi, ((w, b), fs) in enumerate(zip(convs, filter_sizes)):
        col = gi * n_filters
        for k in range(fs):
            wpack = wpack.at[k * embedding_dim:(k + 1) * embedding_dim,
                             col:col + n_filters].set(w[k])
        bpack = bpack.at[:, col:col + n_filters].set(b)
    return wpack.astype(jnp.bfloat16), bpack


def init_params(key, vocab_size, embedding_dim, n_filters, filter_sizes, output_dim):
    k_emb, k_conv, k_fc1, k_fc2 = jax.random.split(key, 4)
    params = {"filter_sizes": tuple(filter_sizes)}
    # bf16 table: halves the HBM bytes moved by the embedding gather.
    params["embedding"] = (0.1 * jax.random.normal(
        k_emb, (vocab_size, embedding_dim), jnp.float32)).astype(jnp.bfloat16)
    convs = []
    for fs, kk in zip(filter_sizes, jax.random.split(k_conv, len(filter_sizes))):
        kw, kb = jax.random.split(kk)
        # PyTorch Conv2d weight (n_filters, 1, fs, E) stored transposed as (fs, E, n_filters).
        w = 0.1 * jax.random.normal(kw, (fs, embedding_dim, n_filters), jnp.float32)
        b = 0.1 * jax.random.normal(kb, (1, n_filters), jnp.float32)
        convs.append((w, b))
    params["conv_raw"] = convs
    params["conv_wpack"], params["conv_bpack"] = _pack_conv_params(
        convs, filter_sizes, embedding_dim, n_filters)
    k1w, k1b = jax.random.split(k_fc1)
    k2w, k2b = jax.random.split(k_fc2)
    # nn.Linear weights stored as (in_features, out_features) for y = x @ W + b.
    params["fc1_w"] = 0.1 * jax.random.normal(
        k1w, (len(filter_sizes) * n_filters, n_filters), jnp.float32)
    params["fc1_b"] = 0.1 * jax.random.normal(k1b, (1, n_filters), jnp.float32)
    params["fc2_w"] = 0.1 * jax.random.normal(k2w, (n_filters, output_dim), jnp.float32)
    params["fc2_b"] = 0.1 * jax.random.normal(k2b, (1, output_dim), jnp.float32)
    return params


def reference_forward(params, text):
    """Pure-JAX f32 reference mirroring the PyTorch forward (eval-mode dropout)."""
    emb = jnp.take(params["embedding"].astype(jnp.float32), text, axis=0)
    pooled = []
    for (w, b), fs in zip(params["conv_raw"], params["filter_sizes"]):
        length = emb.shape[1] - fs + 1
        acc = jnp.zeros((emb.shape[0], length, w.shape[-1]), jnp.float32)
        for k in range(fs):
            acc = acc + jnp.einsum("ble,ef->blf", emb[:, k:k + length, :], w[k])
        acc = jnp.maximum(acc + b[None], 0.0)
        pooled.append(jnp.max(acc, axis=1))
    cat = jnp.concatenate(pooled, axis=1)
    h = cat @ params["fc1_w"] + params["fc1_b"]
    return h @ params["fc2_w"] + params["fc2_b"]


if __name__ == "__main__":
    vocab_size = 50
    embedding_dim = 32
    n_filters = 8
    filter_sizes = (2, 3, 4)
    output_dim = 4
    batch, seq_len = 2, 16

    key = jax.random.PRNGKey(0)
    k_param, k_text = jax.random.split(key)
    params = init_params(
        k_param, vocab_size, embedding_dim, n_filters, filter_sizes, output_dim)
    text = jax.random.randint(
        k_text, (batch, seq_len), 0, vocab_size, dtype=jnp.int32)

    out = cnn_forward(params, text)
    out = jax.block_until_ready(out)
    assert out.shape == (batch, output_dim), out.shape
    assert out.dtype == jnp.float32

    ref = reference_forward(params, text)
    max_err = float(jnp.max(jnp.abs(out - ref)))
    assert max_err < 5e-2, f"max abs error vs reference: {max_err}"
    print("KERNEL_OK")
</pallas_src>

<mosaic_0001>
module attributes {stable_mosaic.version = 11 : i64} {
  func.func @_fused_cnn_kernel(%arg0: i32, %arg1: memref<8x24x32xbf16, #tpu.memory_space<vmem>>, %arg2: memref<128x128xbf16, #tpu.memory_space<vmem>>, %arg3: memref<1x128xf32, #tpu.memory_space<vmem>>, %arg4: memref<16x128xf32, #tpu.memory_space<vmem>>, %arg5: memref<128x128xbf16, #tpu.memory_space<vmem>>, %arg6: memref<1x128xf32, #tpu.memory_space<vmem>>, %arg7: memref<8x128xf32, #tpu.memory_space<vmem>>) attributes {dimension_semantics = [#tpu.dimension_semantics<parallel>], iteration_bounds = array<i64: 1>, scalar_prefetch = 0 : i64, scratch_operands = 0 : i64, tpu.core_type = #tpu.core_type<tc>, window_params = [{transform_indices = @transform_0, window_bounds = array<i64: 8, 24, 32>}, {pipeline_mode = #tpu.pipeline_mode<synchronous>, transform_indices = @transform_1, window_bounds = array<i64: 128, 128>}, {pipeline_mode = #tpu.pipeline_mode<synchronous>, transform_indices = @transform_2, window_bounds = array<i64: 1, 128>}, {pipeline_mode = #tpu.pipeline_mode<synchronous>, transform_indices = @transform_3, window_bounds = array<i64: 16, 128>}, {pipeline_mode = #tpu.pipeline_mode<synchronous>, transform_indices = @transform_4, window_bounds = array<i64: 128, 128>}, {pipeline_mode = #tpu.pipeline_mode<synchronous>, transform_indices = @transform_5, window_bounds = array<i64: 1, 128>}, {transform_indices = @transform_6, window_bounds = array<i64: 8, 128>}]} {
    %c0 = arith.constant 0 : index
    %c0_0 = arith.constant 0 : index
    %c0_1 = arith.constant 0 : index
    %0 = vector.load %arg1[%c0, %c0_0, %c0_1] : memref<8x24x32xbf16, #tpu.memory_space<vmem>>, vector<8x24x32xbf16>
    %1 = vector.extract_strided_slice %0 {offsets = [0, 0, 0], sizes = [8, 16, 32], strides = [1, 1, 1]} : vector<8x24x32xbf16> to vector<8x16x32xbf16>
    %2 = vector.extract_strided_slice %0 {offsets = [0, 1, 0], sizes = [8, 16, 32], strides = [1, 1, 1]} : vector<8x24x32xbf16> to vector<8x16x32xbf16>
    %3 = vector.extract_strided_slice %0 {offsets = [0, 2, 0], sizes = [8, 16, 32], strides = [1, 1, 1]} : vector<8x24x32xbf16> to vector<8x16x32xbf16>
    %4 = vector.extract_strided_slice %0 {offsets = [0, 3, 0], sizes = [8, 16, 32], strides = [1, 1, 1]} : vector<8x24x32xbf16> to vector<8x16x32xbf16>
    %5 = tpu.concatenate %1, %2, %3, %4 in 2 : vector<8x16x32xbf16>, vector<8x16x32xbf16>, vector<8x16x32xbf16>, vector<8x16x32xbf16> -> vector<8x16x128xbf16>
    %6 = vector.shape_cast %5 : vector<8x16x128xbf16> to vector<128x128xbf16>
    %c0_2 = arith.constant 0 : index
    %c0_3 = arith.constant 0 : index
    %7 = vector.load %arg2[%c0_2, %c0_3] : memref<128x128xbf16, #tpu.memory_space<vmem>>, vector<128x128xbf16>
    %cst = arith.constant dense<0.000000e+00> : vector<128x128xf32>
    %8 = tpu.matmul %6, %7, %cst {dimension_numbers = #tpu.dot_dimension_numbers<[1], [0], [0], [1], [0, 0, 1, 1], [], []>} : vector<128x128xbf16>, vector<128x128xbf16>, vector<128x128xf32> -> vector<128x128xf32>
    %9 = vector.shape_cast %8 : vector<128x128xf32> to vector<8x16x128xf32>
    %c0_4 = arith.constant 0 : index
    %c0_5 = arith.constant 0 : index
    %10 = vector.load %arg3[%c0_4, %c0_5] : memref<1x128xf32, #tpu.memory_space<vmem>>, vector<1x128xf32>
    %11 = vector.shape_cast %10 : vector<1x128xf32> to vector<1x1x128xf32>
    %12 = vector.broadcast %11 : vector<1x1x128xf32> to vector<8x16x128xf32>
    %13 = arith.addf %9, %12 : vector<8x16x128xf32>
    %cst_6 = arith.constant 0.000000e+00 : f32
    %14 = vector.broadcast %cst_6 : f32 to vector<8x16x128xf32>
    %15 = arith.maximumf %13, %14 : vector<8x16x128xf32>
    %c0_7 = arith.constant 0 : index
    %c0_8 = arith.constant 0 : index
    %16 = vector.load %arg4[%c0_7, %c0_8] : memref<16x128xf32, #tpu.memory_space<vmem>>, vector<16x128xf32>
    %17 = vector.shape_cast %16 : vector<16x128xf32> to vector<1x16x128xf32>
    %18 = vector.broadcast %17 : vector<1x16x128xf32> to vector<8x16x128xf32>
    %19 = arith.mulf %15, %18 : vector<8x16x128xf32>
    %cst_9 = arith.constant dense<0xFF800000> : vector<8x128xf32>
    %20 = vector.multi_reduction <maximumf>, %19, %cst_9 [1] : vector<8x16x128xf32> to vector<8x128xf32>
    %21 = arith.truncf %20 : vector<8x128xf32> to vector<8x128xbf16>
    %c0_10 = arith.constant 0 : index
    %c0_11 = arith.constant 0 : index
    %22 = vector.load %arg5[%c0_10, %c0_11] : memref<128x128xbf16, #tpu.memory_space<vmem>>, vector<128x128xbf16>
    %cst_12 = arith.constant dense<0.000000e+00> : vector<8x128xf32>
    %23 = tpu.matmul %21, %22, %cst_12 {dimension_numbers = #tpu.dot_dimension_numbers<[1], [0], [0], [1], [0, 0, 1, 1], [], []>} : vector<8x128xbf16>, vector<128x128xbf16>, vector<8x128xf32> -> vector<8x128xf32>
    %c0_13 = arith.constant 0 : index
    %c0_14 = arith.constant 0 : index
    %24 = vector.load %arg6[%c0_13, %c0_14] : memref<1x128xf32, #tpu.memory_space<vmem>>, vector<1x128xf32>
    %25 = vector.broadcast %24 : vector<1x128xf32> to vector<8x128xf32>
    %26 = arith.addf %23, %25 : vector<8x128xf32>
    %c0_15 = arith.constant 0 : index
    %c0_16 = arith.constant 0 : index
    %27 = vector.load %arg7[%c0_15, %c0_16] : memref<8x128xf32, #tpu.memory_space<vmem>>, vector<8x128xf32>
    tpu.vector_store %arg7[%c0_15, %c0_16], %26 {strides = array<i32>} : memref<8x128xf32, #tpu.memory_space<vmem>>, vector<8x128xf32>,
    return
  }
  func.func @transform_0(%arg0: i32) -> (i32, i32, i32) {
    %c0_i32 = arith.constant 0 : i32
    %c0_i32_0 = arith.constant 0 : i32
    %c0_i32_1 = arith.constant 0 : i32
    return %arg0, %c0_i32, %c0_i32_0 : i32, i32, i32
  }
  func.func @transform_1(%arg0: i32) -> (i32, i32) {
    %c0_i32 = arith.constant 0 : i32
    %c0_i32_0 = arith.constant 0 : i32
    %c0_i32_1 = arith.constant 0 : i32
    return %c0_i32, %c0_i32_0 : i32, i32
  }
  func.func @transform_2(%arg0: i32) -> (i32, i32) {
    %c0_i32 = arith.constant 0 : i32
    %c0_i32_0 = arith.constant 0 : i32
    %c0_i32_1 = arith.constant 0 : i32
    return %c0_i32, %c0_i32_0 : i32, i32
  }
  func.func @transform_3(%arg0: i32) -> (i32, i32) {
    %c0_i32 = arith.constant 0 : i32
    %c0_i32_0 = arith.constant 0 : i32
    %c0_i32_1 = arith.constant 0 : i32
    return %c0_i32, %c0_i32_0 : i32, i32
  }
  func.func @transform_4(%arg0: i32) -> (i32, i32) {
    %c0_i32 = arith.constant 0 : i32
    %c0_i32_0 = arith.constant 0 : i32
    %c0_i32_1 = arith.constant 0 : i32
    return %c0_i32, %c0_i32_0 : i32, i32
  }
  func.func @transform_5(%arg0: i32) -> (i32, i32) {
    %c0_i32 = arith.constant 0 : i32
    %c0_i32_0 = arith.constant 0 : i32
    %c0_i32_1 = arith.constant 0 : i32
    return %c0_i32, %c0_i32_0 : i32, i32
  }
  func.func @transform_6(%arg0: i32) -> (i32, i32) {
    %c0_i32 = arith.constant 0 : i32
    %c0_i32_0 = arith.constant 0 : i32
    return %arg0, %c0_i32 : i32, i32
  }
}

</mosaic_0001>

<bundles_post_ra>
// kernel: tpu_custom_call.1
= control target key start
LH: loop header
LB: loop body
LE: loop exit
PB: predicated region body
PF: predicated region fallthrough
CT: control target
= control target key end

     0   :  { %11 = vsyncpa [#allocation3], 0  ;;  %s1505_s0 = inlined_call_operand.hbm [shape: bf16[8,24,32], index: 0, kind: input, shape index: {}]   ;;  %s1506_s1 = inlined_call_operand.hbm [shape: bf16[128,128], index: 1, kind: input, shape index: {}]   ;;  %s1507_s2 = inlined_call_operand.vmem [shape: f32[1,128], index: 2, kind: input, shape index: {}]   ;;  %s1508_s3 = inlined_call_operand.hbm [shape: f32[16,128], index: 3, kind: input, shape index: {}]   ;;  %s1509_s4 = inlined_call_operand.hbm [shape: bf16[128,128], index: 4, kind: input, shape index: {}]   ;;  %s1510_s5 = inlined_call_operand.vmem [shape: f32[1,128], index: 5, kind: input, shape index: {}]   ;;  %s1511_s6 = inlined_call_operand.hbm [shape: f32[8,128], index: 6, kind: output, shape index: {}]  }
   0x1   :  { %12 = vsyncpa [#allocation6], 0 }
   0x2   :  { %13 = vsyncpa [#allocation9], 0 }
   0x3   :  { %14 = vsyncpa [#allocation4], 0  ;;  %s1187_s21 = smov [#allocation5]   ;;  %s1188_s23 = smov [#allocation2]  }
   0x4   :  { %s32_s22 = sshll.u32 %s1187_s21, 4  ;;  %s20_s24 = sshll.u32 %s1188_s23, 4  ;;  %s33_s22 = int_to_ptr.vmem [resolvable:$true] %s32_s22  ;;  %s1235_s24 = int_to_ptr.vmem [resolvable:$true] %s20_s24 }
   0x5   :  { %s1069_s27 = scalar_lea.hbm %s1506_s1, 1024 }
   0x6   :  { %p1070_p0 = scmp.ne.s32.totalorder %s1506_s1, %s1069_s27  ;;  %p1073_p1 = scmp.lt.u32.totalorder %s1069_s27, %s1506_s1 }
   0x8   :  { %p1075_p2 = pnand %p1073_p1, %p1070_p0 }
   0xa   :  { %1078 = shalt.err (!%p1075_p2)
}
   0xb   :  { %s1079_s8 = scalar_lea.vmem %s33_s22, 1024  ;;  %p1084_p4 = scmp.lt.s32.totalorder %s33_s22, %s33_s22 }
   0xc   :  { %p1080_p3 = scmp.ne.s32.totalorder %s33_s22, %s1079_s8  ;;  %p1085_p5 = scmp.lt.s32.totalorder %s1079_s8, %s1079_s8 }
   0xe   :  { %p1086_p6 = por %p1085_p5, %p1084_p4 }
  0x10   :  { %p1087_p7 = pnand %p1086_p6, %p1080_p3 }
  0x12   :  { %1090 = shalt.err (!%p1087_p7)
}
  0x13   :  { %s1189_s9 = smov 64   ;;  %s1190_s10 = smov 4  }
  0x14   :  { %38 = dma.hbm_to_vmem [thread:$0]  %s1506_s1, 1024, %s33_s22, [#allocation6], %s1189_s9, %s1189_s9, %s1190_s10  }
  0x15   :  { %s1091_s15 = scalar_lea.hbm %s1505_s0, 1536 }
  0x16   :  { %p1092_p8 = scmp.ne.s32.totalorder %s1505_s0, %s1091_s15  ;;  %p1095_p9 = scmp.lt.u32.totalorder %s1091_s15, %s1505_s0 }
  0x18   :  { %p1097_p10 = pnand %p1095_p9, %p1092_p8 }
  0x1a   :  { %1100 = shalt.err (!%p1097_p10)
}
  0x1b   :  { %s1101_s20 = scalar_lea.vmem %s1235_s24, 1536  ;;  %p1106_p12 = scmp.lt.s32.totalorder %s1235_s24, %s1235_s24 }
  0x1c   :  { %p1102_p11 = scmp.ne.s32.totalorder %s1235_s24, %s1101_s20  ;;  %p1107_p13 = scmp.lt.s32.totalorder %s1101_s20, %s1101_s20 }
  0x1e   :  { %p1108_p0 = por %p1107_p13, %p1106_p12 }
  0x20   :  { %p1109_p1 = pnand %p1108_p0, %p1102_p11 }
  0x22   :  { %1112 = shalt.err (!%p1109_p1)
}
  0x23   :  { %26 = dma.hbm_to_vmem [thread:$0]  %s1505_s0, 1536, %s1235_s24, [#allocation3], %s1189_s9, %s1189_s9, %s1190_s10  }
  0x24   :  { %s1191_s22 = smov [#allocation7]   ;;  %s1113_s27 = scalar_lea.hbm %s1508_s3, 256 }
  0x25   :  { %s46_s23 = sshll.u32 %s1191_s22, 4  ;;  %p1114_p2 = scmp.ne.s32.totalorder %s1508_s3, %s1113_s27  ;;  %s47_s23 = int_to_ptr.vmem [resolvable:$true] %s46_s23 }
  0x26   :  { %p1117_p3 = scmp.lt.u32.totalorder %s1113_s27, %s1508_s3 }
  0x28   :  { %p1119_p4 = pnand %p1117_p3, %p1114_p2 }
  0x2a   :  { %1122 = shalt.err (!%p1119_p4)
}
  0x2b   :  { %s1123_s8 = scalar_lea.vmem %s47_s23, 256  ;;  %p1128_p6 = scmp.lt.s32.totalorder %s47_s23, %s47_s23 }
  0x2c   :  { %p1124_p5 = scmp.ne.s32.totalorder %s47_s23, %s1123_s8  ;;  %p1129_p7 = scmp.lt.s32.totalorder %s1123_s8, %s1123_s8 }
  0x2e   :  { %p1130_p8 = por %p1129_p7, %p1128_p6 }
  0x30   :  { %p1131_p9 = pnand %p1130_p8, %p1124_p5 }
  0x32   :  { %1134 = shalt.err (!%p1131_p9)
}
  0x33   :  { %s1192_s0 = smov 128   ;;  %s1193_s24 = smov 8  }
  0x34   :  { %52 = dma.hbm_to_vmem [thread:$0]  %s1508_s3, 256, %s47_s23, [#allocation6], %s1192_s0, %s1192_s0, %s1193_s24  }
  0x35   :  { %s1194_s13 = smov [#allocation8]   ;;  %s1135_s17 = scalar_lea.hbm %s1509_s4, 1024 }
  0x36   :  { %s58_s14 = sshll.u32 %s1194_s13, 4  ;;  %p1136_p10 = scmp.ne.s32.totalorder %s1509_s4, %s1135_s17  ;;  %s59_s14 = int_to_ptr.vmem [resolvable:$true] %s58_s14 }
  0x37   :  { %p1139_p11 = scmp.lt.u32.totalorder %s1135_s17, %s1509_s4 }
  0x39   :  { %p1141_p12 = pnand %p1139_p11, %p1136_p10 }
  0x3b   :  { %1144 = shalt.err (!%p1141_p12)
}
  0x3c   :  { %s1145_s21 = scalar_lea.vmem %s59_s14, 1024  ;;  %p1150_p0 = scmp.lt.s32.totalorder %s59_s14, %s59_s14 }
  0x3d   :  { %p1146_p13 = scmp.ne.s32.totalorder %s59_s14, %s1145_s21  ;;  %p1151_p1 = scmp.lt.s32.totalorder %s1145_s21, %s1145_s21 }
  0x3f   :  { %p1152_p2 = por %p1151_p1, %p1150_p0 }
  0x41   :  { %p1153_p3 = pnand %p1152_p2, %p1146_p13 }
  0x43   :  { %1156 = shalt.err (!%p1153_p3)
}
  0x44   :  { %64 = dma.hbm_to_vmem [thread:$0]  %s1509_s4, 1024, %s59_s14, [#allocation9], %s1189_s9, %s1189_s9, %s1190_s10  }
  0x45   :  { %1179 = dma.done.wait [#allocation3], 1536  }
  0x46   :  { %1180 = vsyncadd [#allocation3], 4294965760 }
  0x47   :  { %1181 = dma.done.wait [#allocation6], 1280  }
  0x48   :  { %1182 = vsyncadd [#allocation6], 4294966016 }
  0x49   :  { %1183 = dma.done.wait [#allocation9], 1024  }
  0x4a   :  { %1184 = vsyncadd [#allocation9], 4294966272  ;;  %vm168_vm0 = vsmask.f32 7424  ;;  %v1299_v0 = vld [vmem:[#allocation2 + $0x18] sm:$0xff]   ;;  %vm281_vm1 = vcmask 1046528  }
  0x4b   :  { %v1301_v1 = vld [vmem:[#allocation2 + $0x20] ss:$0 sps:$4 sm:$0xff]   ;;  %v288_v3 = vrot.slane %v1299_v0, 1  ;;  %v1040_v5 = vld [vmem:[#allocation2 + $0x8] ss:$0 sps:$4 sm:$0xff]   ;;  %v1308_v7 = vld [vmem:[#allocation2 + $0xc] sm:$0xff]  }
  0x4c   :  { %v1303_v2 = vld [vmem:[#allocation2] sm:$0xff]   ;;  %v289_v4 = vrot.slane %v1301_v1, 1  ;;  %v283_v9 = vrot.slane %v1040_v5, 1  ;;  %v1042_v10 = vld [vmem:[#allocation2 + $0x14] ss:$0 sps:$4 sm:$0xff]   ;;  %v285_v14 = vrot.slane %v1308_v7, 1 }
  0x4d   :  { %v282_v6 = vrot.slane %v1303_v2, 1  ;;  %v170_v11 = vshrl.u32 %v1303_v2, 16  ;;  %v172_v12 = vshll.u32 %v1303_v2, 16  ;;  %v1313_v13 = vld [vmem:[#allocation2 + $0x24] sm:$0xff]   ;;  %vm322_vm2 = vsmask.f32 6400 }
  0x4e   :  { %v290_v8 = vsel %vm281_vm1, %v288_v3, %v289_v4  ;;  %v177_v15 = vshll.u32 %v1040_v5, 16  ;;  %v286_v17 = vrot.slane %v1042_v10, 1  ;;  %v1318_v19 = vld [vmem:[#allocation2 + $0x2c] ss:$0 sps:$4 sm:$0xff]   ;;  %v291_v21 = vrot.slane %v1313_v13, 1  ;;  %s1195_s4 = smov 32  }
  0x4f   :  { %310 = vrot.lane.b32.xlu0 %v290_v8, %s1189_s9  ;;  %v284_v16 = vsel %vm281_vm1, %v282_v6, %v283_v9  ;;  %v174_v18 = vrot.slane %v172_v12, 1  ;;  %v182_v22 = vshrl.u32 %v1308_v7, 16  ;;  %v184_v23 = vshll.u32 %v1308_v7, 16  ;;  %v1340_v56 = vld [vmem:[#allocation2 + $0x3c] sm:$0xff]   ;;  %v1342_v57 = vld [vmem:[#allocation2 + $0x44] ss:$0 sps:$4 sm:$0xff]  }
  0x50   :  { %306 = vrot.lane.b32.xlu1 %v284_v16, %s1189_s9  ;;  %v179_v20 = vrot.slane %v177_v15, 1  ;;  %v287_v24 = vsel %vm281_vm1, %v285_v14, %v286_v17  ;;  %v292_v26 = vrot.slane %v1318_v19, 1  ;;  %v189_v27 = vshll.u32 %v1042_v10, 16  ;;  %v1053_v62 = vld [vmem:[#allocation5] sm:$0xff]   ;;  %v1054_v6 = vld [vmem:[#allocation5 + $0x8] sm:$0xff]   ;;  %s1196_s10 = smov 96  }
  0x51   :  { %v175_v25 = vor.u32 %v174_v18, %v170_v11  ;;  %v186_v28 = vrot.slane %v184_v23, 1  ;;  %v332_v29 = vrot.slane %v182_v22, 1  ;;  %v333_v30 = vrot.slane %v184_v23, 2  ;;  %v1348_v14 = vld [vmem:[#allocation2 + $0x38] ss:$0 sps:$4 sm:$0xff]   ;;  %972 = vmatprep.subr.bf16.mxu0 %v1053_v62  ;;  %v1055_v23 = vld [vmem:[#allocation5 + $0x10] sm:$0xff]  }
  0x52   :  { %v335_v31 = vshrl.u32 %v1042_v10, 16  ;;  %v293_v33 = vsel %vm281_vm1, %v291_v21, %v292_v26  ;;  %v191_v34 = vrot.slane %v189_v27, 1  ;;  %v338_v35 = vrot.slane %v189_v27, 2  ;;  %973 = vmatpush3.bf16.msra.mxu0 %v1053_v62  ;;  %s1199_s26 = smov [#allocation10]  }
  0x53   :  { %v180_v32 = vsel %vm168_vm0, %v175_v25, %v179_v20  ;;  %v187_v36 = vor.u32 %v186_v28, %v182_v22  ;;  %v334_v37 = vor.u32 %v333_v30, %v332_v29  ;;  %v323_v39 = vrot.slane %v170_v11, 1  ;;  %974 = vmatprep.subr.bf16.mxu0 %v1054_v6  ;;  %s902_s27 = sshll.u32 %s1199_s26, 4  ;;  %s903_s27 = int_to_ptr.vmem [resolvable:$true] %s902_s27 }
  0x54   :  { %308 = vrot.lane.b32.xlu1 %v287_v24, %s1189_s9  ;;  %265 = vrot.lane.b32.xlu0 %v180_v32, %s1195_s4  ;;  %v337_v38 = vrot.slane %v335_v31, 1  ;;  %v324_v40 = vrot.slane %v172_v12, 2  ;;  %v326_v41 = vshrl.u32 %v1040_v5, 16  ;;  %v329_v42 = vrot.slane %v177_v15, 2  ;;  %v1346_v12 = vld [vmem:[#allocation2 + $0x30] sm:$0xff]   ;;  %s1157_s28 = scalar_lea.vmem %s903_s27, 128  ;;  %p1162_p5 = scmp.lt.s32.totalorder %s903_s27, %s903_s27 }
  0x55   :  { %v206_v43 = vshrl.u32 %v1313_v13, 16  ;;  %v192_v44 = vsel %vm168_vm0, %v187_v36, %v191_v34  ;;  %v208_v46 = vshll.u32 %v1313_v13, 16  ;;  %v213_v47 = vshll.u32 %v1318_v19, 16  ;;  %p1158_p4 = scmp.ne.s32.totalorder %s903_s27, %s1157_s28  ;;  %p1163_p6 = scmp.lt.s32.totalorder %s1157_s28, %s1157_s28 }
  0x56   :  { %v339_v45 = vor.u32 %v338_v35, %v337_v38  ;;  %v325_v48 = vor.u32 %v324_v40, %v323_v39  ;;  %v328_v49 = vrot.slane %v326_v41, 1  ;;  %v194_v50 = vshrl.u32 %v1299_v0, 16  ;;  %v1366_v38 = vld [vmem:[#allocation2 + $0x5c] ss:$0 sps:$4 sm:$0xff]   ;;  %975 = vmatpush3.bf16.msra.mxu0 %v1054_v6 }
  0x57   :  { %v196_v51 = vshll.u32 %v1299_v0, 16  ;;  %v210_v53 = vrot.slane %v208_v46, 1  ;;  %v215_v54 = vrot.slane %v213_v47, 1  ;;  %v201_v55 = vshll.u32 %v1301_v1, 16  ;;  %976 = vmatprep.subr.bf16.mxu0 %v1055_v23  ;;  %p1164_p7 = por %p1163_p6, %p1162_p5 }
  0x58   :  { %312 = vrot.lane.b32.xlu1 %v293_v33, %s1189_s9  ;;  %267 = vrot.lane.b32.xlu0 %v192_v44, %s1195_s4  ;;  %v340_v52 = vsel %vm322_vm2, %v334_v37, %v339_v45  ;;  %v330_v58 = vor.u32 %v329_v42, %v328_v49  ;;  %v350_v60 = vrot.slane %v206_v43, 1  ;;  %v351_v61 = vrot.slane %v208_v46, 2  ;;  %v1364_v37 = vld [vmem:[#allocation2 + $0x54] sm:$0xff]   ;;  %v1374_v44 = vld [vmem:[#allocation2 + $0x50] ss:$0 sps:$4 sm:$0xff]  }
  0x59   :  { %v198_v59 = vrot.slane %v196_v51, 1  ;;  %v211_v63 = vor.u32 %v210_v53, %v206_v43  ;;  %v203_v3 = vrot.slane %v201_v55, 1  ;;  %v353_v4 = vshrl.u32 %v1318_v19, 16  ;;  %v1372_v43 = vld [vmem:[#allocation2 + $0x48] sm:$0xff]   ;;  %v1056_v45 = vld [vmem:[#allocation5 + $0x18] sm:$0xff]   ;;  %p1165_p8 = pnand %p1164_p7, %p1158_p4 }
  0x5a   :  { %v356_v5 = vrot.slane %v213_v47, 2  ;;  %v331_v8 = vsel %vm322_vm2, %v325_v48, %v330_v58  ;;  %v352_v10 = vor.u32 %v351_v61, %v350_v60  ;;  %v341_v11 = vrot.slane %v194_v50, 1  ;;  %977 = vmatpush3.bf16.msra.mxu0 %v1055_v23 }
  0x5b   :  { %v199_v9 = vor.u32 %v198_v59, %v194_v50  ;;  %v216_v15 = vsel %vm168_vm0, %v211_v63, %v215_v54  ;;  %v355_v16 = vrot.slane %v353_v4, 1  ;;  %v342_v17 = vrot.slane %v196_v51, 2  ;;  %978 = vmatprep.subr.bf16.mxu0 %v1056_v45  ;;  %v1057_v63 = vld [vmem:[#allocation5 + $0x20] sm:$0xff]  }
  0x5c   :  { %397 = vrot.lane.b32.xlu1 %v340_v52, %s1196_s10  ;;  %395 = vrot.lane.b32.xlu0 %v331_v8, %s1196_s10  ;;  %v344_v18 = vshrl.u32 %v1301_v1, 16  ;;  %v347_v20 = vrot.slane %v201_v55, 2  ;;  %v230_v21 = vshrl.u32 %v1340_v56, 16  ;;  %v232_v22 = vshll.u32 %v1340_v56, 16 }
  0x5d   :  { %v204_v19 = vsel %vm168_vm0, %v199_v9, %v203_v3  ;;  %v357_v24 = vor.u32 %v356_v5, %v355_v16  ;;  %v343_v25 = vor.u32 %v342_v17, %v341_v11  ;;  %v237_v27 = vshll.u32 %v1342_v57, 16 }
  0x5e   :  { %v346_v26 = vrot.slane %v344_v18, 1  ;;  %v234_v28 = vrot.slane %v232_v22, 1  ;;  %v218_v29 = vshrl.u32 %v1346_v12, 16  ;;  %v220_v1 = vshll.u32 %v1346_v12, 16  ;;  %979 = vmatpush3.bf16.msra.mxu0 %v1056_v45  ;;  %v1058_v18 = vld [vmem:[#allocation5 + $0x28] sm:$0xff]  }
  0x5f   :  { %v225_v30 = vshll.u32 %v1348_v14, 16  ;;  %v358_v31 = vsel %vm322_vm2, %v352_v10, %v357_v24  ;;  %v239_v34 = vrot.slane %v237_v27, 1  ;;  %v297_v40 = vrot.slane %v1340_v56, 1  ;;  %980 = vmatprep.subr.bf16.mxu0 %v1057_v63 }
  0x60   :  { %271 = vrot.lane.b32.xlu1 %v216_v15, %s1195_s4  ;;  %269 = vrot.lane.b32.xlu0 %v204_v19, %s1195_s4  ;;  %v348_v32 = vor.u32 %v347_v20, %v346_v26  ;;  %v235_v33 = vor.u32 %v234_v28, %v230_v21  ;;  %v222_v35 = vrot.slane %v220_v1, 1  ;;  %v298_v41 = vrot.slane %v1342_v57, 1 }
  0x61   :  { %v227_v36 = vrot.slane %v225_v30, 1  ;;  %v294_v42 = vrot.slane %v1346_v12, 1  ;;  %v368_v47 = vrot.slane %v230_v21, 1  ;;  %v369_v48 = vrot.slane %v232_v22, 2 }
  0x62   :  { %v349_v39 = vsel %vm322_vm2, %v343_v25, %v348_v32  ;;  %v223_v46 = vor.u32 %v222_v35, %v218_v29  ;;  %v295_v49 = vrot.slane %v1348_v14, 1  ;;  %v371_v50 = vshrl.u32 %v1342_v57, 16  ;;  %981 = vmatpush3.bf16.msra.mxu0 %v1057_v63 }
  0x63   :  { %v374_v51 = vrot.slane %v237_v27, 2  ;;  %v359_v52 = vrot.slane %v218_v29, 1  ;;  %v240_v53 = vsel %vm168_vm0, %v235_v33, %v239_v34  ;;  %v360_v55 = vrot.slane %v220_v1, 2  ;;  %v1059_v29 = vld [vmem:[#allocation5 + $0x30] sm:$0xff]   ;;  %982 = vmatprep.subr.bf16.mxu0 %v1058_v18 }
  0x64   :  { %401 = vrot.lane.b32.xlu1 %v358_v31, %s1196_s10  ;;  %399 = vrot.lane.b32.xlu0 %v349_v39, %s1196_s10  ;;  %v228_v54 = vsel %vm168_vm0, %v223_v46, %v227_v36  ;;  %v362_v58 = vshrl.u32 %v1348_v14, 16  ;;  %v299_v59 = vsel %vm281_vm1, %v297_v40, %v298_v41  ;;  %v373_v60 = vrot.slane %v371_v50, 1 }
  0x65   :  { %v365_v61 = vrot.slane %v225_v30, 2  ;;  %v256_v62 = vshll.u32 %v1364_v37, 16  ;;  %v370_v3 = vor.u32 %v369_v48, %v368_v47  ;;  %v254_v4 = vshrl.u32 %v1364_v37, 16 }
  0x66   :  { %v364_v57 = vrot.slane %v362_v58, 1  ;;  %v261_v5 = vshll.u32 %v1366_v38, 16  ;;  %v375_v6 = vor.u32 %v374_v51, %v373_v60  ;;  %v244_v9 = vshll.u32 %v1372_v43, 16  ;;  %983 = vmatpush3.bf16.msra.mxu0 %v1058_v18 }
  0x67   :  { %v258_v8 = vrot.slane %v256_v62, 1  ;;  %v249_v10 = vshll.u32 %v1374_v44, 16  ;;  %v296_v11 = vsel %vm281_vm1, %v294_v42, %v295_v49  ;;  %v361_v14 = vor.u32 %v360_v55, %v359_v52  ;;  %984 = vmatprep.subr.bf16.mxu0 %v1059_v29  ;;  %v1060_v42 = vld [vmem:[#allocation5 + $0x38] sm:$0xff]  }
  0x68   :  { %275 = vrot.lane.b32.xlu1 %v240_v53, %s1195_s4  ;;  %273 = vrot.lane.b32.xlu0 %v228_v54, %s1195_s4  ;;  %v366_v15 = vor.u32 %v365_v61, %v364_v57  ;;  %v242_v16 = vshrl.u32 %v1372_v43, 16  ;;  %v246_v17 = vrot.slane %v244_v9, 1  ;;  %v263_v19 = vrot.slane %v261_v5, 1 }
  0x69   :  { %v303_v20 = vrot.slane %v1364_v37, 1  ;;  %v376_v21 = vsel %vm322_vm2, %v370_v3, %v375_v6  ;;  %v259_v22 = vor.u32 %v258_v8, %v254_v4  ;;  %v251_v23 = vrot.slane %v249_v10, 1 }
  0x6a   :  { %v304_v24 = vrot.slane %v1366_v38, 1  ;;  %v367_v25 = vsel %vm322_vm2, %v361_v14, %v366_v15  ;;  %v247_v26 = vor.u32 %v246_v17, %v242_v16  ;;  %v300_v27 = vrot.slane %v1372_v43, 1  ;;  %985 = vmatpush3.bf16.msra.mxu0 %v1059_v29 }
  0x6b   :  { %v389_v28 = vshrl.u32 %v1366_v38, 16  ;;  %v301_v1 = vrot.slane %v1374_v44, 1  ;;  %v380_v30 = vshrl.u32 %v1374_v44, 16  ;;  %v386_v31 = vrot.slane %v254_v4, 1  ;;  %986 = vmatprep.subr.bf16.mxu0 %v1060_v42 }
  0x6c   :  { %316 = vrot.lane.b32.xlu1 %v299_v59, %s1189_s9  ;;  %314 = vrot.lane.b32.xlu0 %v296_v11, %s1189_s9  ;;  %v387_v32 = vrot.slane %v256_v62, 2  ;;  %v392_v33 = vrot.slane %v261_v5, 2  ;;  %v377_v34 = vrot.slane %v242_v16, 1  ;;  %v378_v36 = vrot.slane %v244_v9, 2 }
  0x6d   :  { %v391_v35 = vrot.slane %v389_v28, 1  ;;  %v264_v39 = vsel %vm168_vm0, %v259_v22, %v263_v19  ;;  %v252_v38 = vsel %vm168_vm0, %v247_v26, %v251_v23  ;;  %v382_v40 = vrot.slane %v380_v30, 1 }
  0x6e   :  { %v383_v41 = vrot.slane %v249_v10, 2  ;;  %v305_v44 = vsel %vm281_vm1, %v303_v20, %v304_v24  ;;  %v302_v45 = vsel %vm281_vm1, %v300_v27, %v301_v1  ;;  %v388_v46 = vor.u32 %v387_v32, %v386_v31  ;;  %987 = vmatpush3.bf16.msra.mxu0 %v1060_v42  ;;  %v1067_v42 = vld [vmem:[#allocation8 + $0x30] sm:$0xff]  }
  0x6f   :  { %v393_v47 = vor.u32 %v392_v33, %v391_v35  ;;  %v379_v48 = vor.u32 %v378_v36, %v377_v34  ;;  %vm411_vm3 = vcmask 261120   ;;  %vm428_vm4 = vcmask 523264   ;;  %v1061_v36 = vld [vmem:[#allocation8] sm:$0xff]  }
  0x70   :  { %405 = vrot.lane.b32.xlu1 %v376_v21, %s1196_s10  ;;  %403 = vrot.lane.b32.xlu0 %v367_v25, %s1196_s10  ;;  %v384_v49 = vor.u32 %v383_v41, %v382_v40  ;;  %vm445_vm5 = vcmask 785408   ;;  %v1065_v40 = vld [vmem:[#allocation8 + $0x20] sm:$0xff]   ;;  %v1066_v41 = vld [vmem:[#allocation8 + $0x28] sm:$0xff]   ;;  %vm1198_vm6 = vmmov 0   ;;  %vm791_vm7 = vcmask 1041409  }
  0x71   :  { %v394_v50 = vsel %vm322_vm2, %v388_v46, %v393_v47  ;;  %vm793_vm8 = vcmask 1042434   ;;  %vm795_vm9 = vcmask 1043459   ;;  %vm797_vm10 = vcmask 1044484  }
  0x72   :  { %v385_v51 = vsel %vm322_vm2, %v379_v48, %v384_v49  ;;  %vm799_vm11 = vcmask 1045509   ;;  %vm801_vm12 = vcmask 1046534   ;;  %vm803_vm13 = vcmask 1047559  }
  0x74   :  { %279 = vrot.lane.b32.xlu1 %v264_v39, %s1195_s4  ;;  %277 = vrot.lane.b32.xlu0 %v252_v38, %s1195_s4  ;;  %v1197_v39 = vmov 0.0   ;;  %v1064_v38 = vld [vmem:[#allocation8 + $0x18] sm:$0xff]  }
  0x75   :  { %1004 = vmatprep.subr.bf16.mxu1 %v1197_v39  ;;  %1020 = vmatprep.mubr.msk.bf16.mxu1 %vm1198_vm6, %v1197_v39 }
  0x76   :  { %1005 = vmatpush3.bf16.msra.mxu1 %v1061_v36 }
  0x77   :  { %1006 = vmatprep.subr.bf16.mxu1 %v1197_v39 }
  0x78   :  { %320 = vrot.lane.b32.xlu1 %v305_v44, %s1189_s9  ;;  %318 = vrot.lane.b32.xlu0 %v302_v45, %s1189_s9  ;;  %v1068_v44 = vld [vmem:[#allocation8 + $0x38] sm:$0xff]   ;;  %v1452_v45 = vld [vmem:[%s1507_s2] ss:$0 sm:$0xff] }
  0x7c   :  { %409 = vrot.lane.b32.xlu1 %v394_v50, %s1196_s10  ;;  %407 = vrot.lane.b32.xlu0 %v385_v51, %s1196_s10 }
  0xc1   :  { %v311_v52 = vpop.permute.xlu0 %310 }
  0xc2   :  { %v307_v53 = vpop.permute.xlu1 %306 }
  0xc6   :  { %v309_v54 = vpop.permute.xlu1 %308  ;;  %v266_v55 = vpop.permute.xlu0 %265 }
  0xc7   :  { %v413_v60 = vsel %vm411_vm3, %v1303_v2, %v266_v55 }
  0xc8   :  { %v430_v3 = vsel %vm428_vm4, %v413_v60, %v307_v53 }
  0xca   :  { %v313_v58 = vpop.permute.xlu1 %312  ;;  %v268_v59 = vpop.permute.xlu0 %267 }
  0xcb   :  { %v415_v61 = vsel %vm411_vm3, %v1308_v7, %v268_v59 }
  0xcc   :  { %v432_v57 = vsel %vm428_vm4, %v415_v61, %v309_v54  ;;  %v1457_v54 = vld [vmem:[#allocation7] sm:$0xff] }
  0xce   :  { %v398_v62 = vpop.permute.xlu1 %397  ;;  %v396_v63 = vpop.permute.xlu0 %395 }
  0xcf   :  { %v447_v4 = vsel %vm445_vm5, %v430_v3, %v396_v63  ;;  %v450_v5 = vsel %vm445_vm5, %v432_v57, %v398_v62 }
  0xd0   :  { %988 = vmatprep.mubr.bf16.mxu0 %v447_v4 }
  0xd1   :  { %989 = vmatmul.mubr.bf16.vlgmr.msra.gmra.mrb[0].mxu0 %v450_v5 }
  0xd2   :  { %v272_v6 = vpop.permute.xlu1 %271  ;;  %v270_v8 = vpop.permute.xlu0 %269 }
  0xd3   :  { %v419_v2 = vsel %vm411_vm3, %v1313_v13, %v272_v6  ;;  %v417_v7 = vsel %vm411_vm3, %v1299_v0, %v270_v8 }
  0xd4   :  { %v434_v11 = vsel %vm428_vm4, %v417_v7, %v311_v52  ;;  %v436_v14 = vsel %vm428_vm4, %v419_v2, %v313_v58  ;;  %v1459_v58 = vld [vmem:[#allocation7 + $0x8] sm:$0xff] }
  0xd6   :  { %v402_v9 = vpop.permute.xlu1 %401  ;;  %v400_v10 = vpop.permute.xlu0 %399 }
  0xd7   :  { %v453_v15 = vsel %vm445_vm5, %v434_v11, %v400_v10  ;;  %v456_v16 = vsel %vm445_vm5, %v436_v14, %v402_v9 }
  0xd8   :  { %992 = vmatprep.mubr.bf16.mxu0 %v453_v15 }
  0xd9   :  { %993 = vmatmul.mubr.bf16.gmra.mrb[4].mxu0 %v456_v16 }
  0xda   :  { %v276_v17 = vpop.permute.xlu1 %275  ;;  %v274_v18 = vpop.permute.xlu0 %273 }
  0xdb   :  { %v423_v13 = vsel %vm411_vm3, %v1340_v56, %v276_v17  ;;  %v421_v0 = vsel %vm411_vm3, %v1346_v12, %v274_v18 }
  0xde   :  { %v317_v19 = vpop.permute.xlu1 %316  ;;  %v315_v20 = vpop.permute.xlu0 %314 }
  0xdf   :  { %v440_v21 = vsel %vm428_vm4, %v423_v13, %v317_v19  ;;  %v438_v22 = vsel %vm428_vm4, %v421_v0, %v315_v20 }
  0xe2   :  { %v406_v23 = vpop.permute.xlu1 %405  ;;  %v404_v24 = vpop.permute.xlu0 %403 }
  0xe3   :  { %v459_v25 = vsel %vm445_vm5, %v438_v22, %v404_v24  ;;  %v462_v26 = vsel %vm445_vm5, %v440_v21, %v406_v23 }
  0xe4   :  { %996 = vmatprep.mubr.bf16.mxu0 %v459_v25 }
  0xe5   :  { %997 = vmatmul.mubr.bf16.gmra.mrb[8].mxu0 %v462_v26 }
  0xe6   :  { %v280_v27 = vpop.permute.xlu1 %279  ;;  %v278_v28 = vpop.permute.xlu0 %277 }
  0xe7   :  { %v427_v56 = vsel %vm411_vm3, %v1364_v37, %v280_v27  ;;  %v425_v12 = vsel %vm411_vm3, %v1372_v43, %v278_v28  ;;  %v1062_v37 = vld [vmem:[#allocation8 + $0x8] sm:$0xff]   ;;  %v1063_v43 = vld [vmem:[#allocation8 + $0x10] sm:$0xff]  }
  0xe8   :  { %1007 = vmatpush3.bf16.msra.mxu1 %v1062_v37 }
  0xe9   :  { %1008 = vmatprep.subr.bf16.mxu1 %v1197_v39 }
  0xea   :  { %v321_v29 = vpop.permute.xlu1 %320  ;;  %v319_v1 = vpop.permute.xlu0 %318 }
  0xeb   :  { %v444_v30 = vsel %vm428_vm4, %v427_v56, %v321_v29  ;;  %v442_v31 = vsel %vm428_vm4, %v425_v12, %v319_v1 }
  0xec   :  { %1009 = vmatpush3.bf16.msra.mxu1 %v1063_v43 }
  0xed   :  { %1010 = vmatprep.subr.bf16.mxu1 %v1197_v39 }
  0xee   :  { %v410_v32 = vpop.permute.xlu1 %409  ;;  %v408_v33 = vpop.permute.xlu0 %407 }
  0xef   :  { %v465_v34 = vsel %vm445_vm5, %v442_v31, %v408_v33  ;;  %v468_v35 = vsel %vm445_vm5, %v444_v30, %v410_v32 }
  0xf0   :  { %1000 = vmatprep.mubr.bf16.mxu0 %v465_v34  ;;  %1011 = vmatpush3.bf16.msra.mxu1 %v1064_v38 }
  0xf1   :  { %1001 = vmatmul.mubr.bf16.gmra.mrb[12].mxu0 %v468_v35  ;;  %1012 = vmatprep.subr.bf16.mxu1 %v1197_v39 }
  0xf4   :  { %1013 = vmatpush3.bf16.msra.mxu1 %v1065_v40 }
  0xf5   :  { %1014 = vmatprep.subr.bf16.mxu1 %v1197_v39 }
  0xf8   :  { %1015 = vmatpush3.bf16.msra.mxu1 %v1066_v41 }
  0xf9   :  { %1016 = vmatprep.subr.bf16.mxu1 %v1197_v39 }
  0xfc   :  { %1017 = vmatpush3.bf16.msra.mxu1 %v1067_v42 }
  0xfd   :  { %1018 = vmatprep.subr.bf16.mxu1 %v1197_v39 }
 0x100   :  { %1019 = vmatpush3.bf16.msra.mxu1 %v1068_v44 }
 0x1a4   :  { %v990_v46 = vpop.f32.mrb[0].mxu0 }
 0x1a5   :  { %v640_v47 = vadd.f32 %v990_v46, %v1452_v45  ;;  %v568_v48 = vpop.f32.mrb[1].mxu0 }
 0x1a6   :  { %v638_v49 = vadd.f32 %v1452_v45, %v568_v48  ;;  %v991_v50 = vpop.f32.mrb[2].mxu0 }
 0x1a7   :  { %v656_v51 = vmax.f32 %v640_v47, 0.0  ;;  %v641_v52 = vadd.f32 %v991_v50, %v1452_v45  ;;  %v571_v53 = vpop.f32.mrb[3].mxu0 }
 0x1a8   :  { %v654_v55 = vmax.f32 %v638_v49, 0.0  ;;  %v639_v59 = vadd.f32 %v1452_v45, %v571_v53 }
 0x1a9   :  { %v657_v60 = vmax.f32 %v641_v52, 0.0  ;;  %v674_v62 = vmul.f32 %v1457_v54, %v656_v51 }
 0x1aa   :  { %v655_v61 = vmax.f32 %v639_v59, 0.0  ;;  %v672_v3 = vmul.f32 %v1457_v54, %v654_v55 }
 0x1ab   :  { %v675_v63 = vmul.f32 %v1459_v58, %v657_v60 }
 0x1ac   :  { %v673_v57 = vmul.f32 %v1459_v58, %v655_v61  ;;  %v994_v4 = vpop.f32.mrb[4].mxu0 }
 0x1ad   :  { %v695_v5 = vmax.f32 %v674_v62, %v675_v63  ;;  %v644_v6 = vadd.f32 %v994_v4, %v1452_v45  ;;  %v584_v8 = vpop.f32.mrb[5].mxu0 }
 0x1ae   :  { %v688_v2 = vmax.f32 %v672_v3, %v673_v57  ;;  %v642_v7 = vadd.f32 %v1452_v45, %v584_v8  ;;  %v995_v9 = vpop.f32.mrb[6].mxu0 }
 0x1af   :  { %v696_v10 = vrot.slane %v695_v5, 4  ;;  %v660_v11 = vmax.f32 %v644_v6, 0.0  ;;  %v645_v14 = vadd.f32 %v995_v9, %v1452_v45  ;;  %v587_v15 = vpop.f32.mrb[7].mxu0 }
 0x1b0   :  { %v689_v16 = vrot.slane %v688_v2, 4  ;;  %v658_v17 = vmax.f32 %v642_v7, 0.0  ;;  %v643_v18 = vadd.f32 %v1452_v45, %v587_v15 }
 0x1b1   :  { %v697_v19 = vmax.f32 %v695_v5, %v696_v10  ;;  %v661_v20 = vmax.f32 %v645_v14, 0.0  ;;  %v678_v22 = vmul.f32 %v1457_v54, %v660_v11 }
 0x1b2   :  { %v690_v13 = vmax.f32 %v688_v2, %v689_v16  ;;  %v659_v0 = vmax.f32 %v643_v18, 0.0  ;;  %v676_v25 = vmul.f32 %v1457_v54, %v658_v17 }
 0x1b3   :  { %v698_v21 = vrot.slane %v697_v19, 2  ;;  %v679_v23 = vmul.f32 %v1459_v58, %v661_v20 }
 0x1b4   :  { %v691_v24 = vrot.slane %v690_v13, 2  ;;  %v677_v26 = vmul.f32 %v1459_v58, %v659_v0 }
 0x1b5   :  { %v699_v27 = vmax.f32 %v697_v19, %v698_v21  ;;  %v709_v28 = vmax.f32 %v678_v22, %v679_v23 }
 0x1b6   :  { %v692_v29 = vmax.f32 %v690_v13, %v691_v24  ;;  %v702_v1 = vmax.f32 %v676_v25, %v677_v26 }
 0x1b7   :  { %v700_v56 = vrot.slane %v699_v27, 1  ;;  %v710_v12 = vrot.slane %v709_v28, 4 }
 0x1b8   :  { %v693_v30 = vrot.slane %v692_v29, 1  ;;  %v703_v31 = vrot.slane %v702_v1, 4  ;;  %v998_v32 = vpop.f32.mrb[8].mxu0 }
 0x1b9   :  { %v701_v33 = vmax.f32 %v699_v27, %v700_v56  ;;  %v711_v34 = vmax.f32 %v709_v28, %v710_v12  ;;  %v648_v35 = vadd.f32 %v998_v32, %v1452_v45  ;;  %v600_v36 = vpop.f32.mrb[9].mxu0 }
 0x1ba   :  { %v694_v39 = vmax.f32 %v692_v29, %v693_v30  ;;  %v704_v37 = vmax.f32 %v702_v1, %v703_v31  ;;  %v646_v43 = vadd.f32 %v1452_v45, %v600_v36  ;;  %v999_v38 = vpop.f32.mrb[10].mxu0 }
 0x1bb   :  { %v745_v40 = vpack.c.bf16 %v701_v33, %v701_v33  ;;  %v712_v41 = vrot.slane %v711_v34, 2  ;;  %v664_v42 = vmax.f32 %v648_v35, 0.0  ;;  %v649_v44 = vadd.f32 %v999_v38, %v1452_v45  ;;  %v603_v46 = vpop.f32.mrb[11].mxu0 }
 0x1bc   :  { %v744_v47 = vpack.c.bf16 %v694_v39, %v694_v39  ;;  %v705_v48 = vrot.slane %v704_v37, 2  ;;  %v662_v49 = vmax.f32 %v646_v43, 0.0  ;;  %v647_v50 = vadd.f32 %v1452_v45, %v603_v46 }
 0x1bd   :  { %v784_v51 = vunpack.c.l.b16 %v745_v40  ;;  %v713_v52 = vmax.f32 %v711_v34, %v712_v41  ;;  %v665_v53 = vmax.f32 %v649_v44, 0.0  ;;  %v682_v62 = vmul.f32 %v1457_v54, %v664_v42 }
 0x1be   :  { %v783_v55 = vunpack.c.l.b16 %v744_v47  ;;  %v706_v59 = vmax.f32 %v704_v37, %v705_v48  ;;  %v663_v60 = vmax.f32 %v647_v50, 0.0  ;;  %v680_v4 = vmul.f32 %v1457_v54, %v662_v49 }
 0x1bf   :  { %v714_v61 = vrot.slane %v713_v52, 1  ;;  %v683_v63 = vmul.f32 %v1459_v58, %v665_v53 }
 0x1c0   :  { %v792_v3 = vsel %vm791_vm7, %v784_v51, %v783_v55  ;;  %v707_v57 = vrot.slane %v706_v59, 1  ;;  %v681_v5 = vmul.f32 %v1459_v58, %v663_v60 }
 0x1c1   :  { %v715_v6 = vmax.f32 %v713_v52, %v714_v61  ;;  %v723_v8 = vmax.f32 %v682_v62, %v683_v63 }
 0x1c2   :  { %v708_v2 = vmax.f32 %v706_v59, %v707_v57  ;;  %v716_v7 = vmax.f32 %v680_v4, %v681_v5 }
 0x1c3   :  { %v747_v9 = vpack.c.bf16 %v715_v6, %v715_v6  ;;  %v724_v10 = vrot.slane %v723_v8, 4 }
 0x1c4   :  { %v746_v11 = vpack.c.bf16 %v708_v2, %v708_v2  ;;  %v717_v14 = vrot.slane %v716_v7, 4  ;;  %v1002_v15 = vpop.f32.mrb[12].mxu0 }
 0x1c5   :  { %v725_v16 = vmax.f32 %v723_v8, %v724_v10  ;;  %v652_v17 = vadd.f32 %v1002_v15, %v1452_v45  ;;  %v616_v18 = vpop.f32.mrb[13].mxu0  ;;  %v786_v21 = vunpack.c.l.b16 %v747_v9  ;;  %v938_v8 = vld [vmem:[%s1510_s5] ss:$0 sm:$0xff] }
 0x1c6   :  { %v785_v19 = vunpack.c.l.b16 %v746_v11  ;;  %v718_v20 = vmax.f32 %v716_v7, %v717_v14  ;;  %v650_v13 = vadd.f32 %v1452_v45, %v616_v18  ;;  %v1003_v0 = vpop.f32.mrb[14].mxu0 }
 0x1c7   :  { %v726_v22 = vrot.slane %v725_v16, 2  ;;  %v668_v23 = vmax.f32 %v652_v17, 0.0  ;;  %v653_v24 = vadd.f32 %v1003_v0, %v1452_v45  ;;  %v619_v25 = vpop.f32.mrb[15].mxu0 }
 0x1c8   :  { %v719_v26 = vrot.slane %v718_v20, 2  ;;  %v666_v27 = vmax.f32 %v650_v13, 0.0  ;;  %v651_v28 = vadd.f32 %v1452_v45, %v619_v25  ;;  %v794_v29 = vsel %vm793_vm8, %v785_v19, %v792_v3 }
 0x1c9   :  { %v727_v1 = vmax.f32 %v725_v16, %v726_v22  ;;  %v669_v56 = vmax.f32 %v653_v24, 0.0  ;;  %v796_v12 = vsel %vm795_vm9, %v786_v21, %v794_v29  ;;  %v686_v33 = vmul.f32 %v1457_v54, %v668_v23 }
 0x1ca   :  { %v720_v30 = vmax.f32 %v718_v20, %v719_v26  ;;  %v667_v31 = vmax.f32 %v651_v28, 0.0  ;;  %v684_v36 = vmul.f32 %v1457_v54, %v666_v27 }
 0x1cb   :  { %v728_v32 = vrot.slane %v727_v1, 1  ;;  %v687_v34 = vmul.f32 %v1459_v58, %v669_v56 }
 0x1cc   :  { %v721_v35 = vrot.slane %v720_v30, 1  ;;  %v685_v39 = vmul.f32 %v1459_v58, %v667_v31 }
 0x1cd   :  { %v729_v37 = vmax.f32 %v727_v1, %v728_v32  ;;  %v737_v43 = vmax.f32 %v686_v33, %v687_v34 }
 0x1ce   :  { %v722_v38 = vmax.f32 %v720_v30, %v721_v35  ;;  %v730_v45 = vmax.f32 %v684_v36, %v685_v39 }
 0x1cf   :  { %v749_v40 = vpack.c.bf16 %v729_v37, %v729_v37  ;;  %v738_v41 = vrot.slane %v737_v43, 4 }
 0x1d0   :  { %v748_v42 = vpack.c.bf16 %v722_v38, %v722_v38  ;;  %v731_v44 = vrot.slane %v730_v45, 4 }
 0x1d1   :  { %v739_v46 = vmax.f32 %v737_v43, %v738_v41  ;;  %v788_v49 = vunpack.c.l.b16 %v749_v40 }
 0x1d2   :  { %v787_v47 = vunpack.c.l.b16 %v748_v42  ;;  %v732_v48 = vmax.f32 %v730_v45, %v731_v44 }
 0x1d3   :  { %v740_v50 = vrot.slane %v739_v46, 2 }
 0x1d4   :  { %v733_v51 = vrot.slane %v732_v48, 2  ;;  %v798_v52 = vsel %vm797_vm10, %v787_v47, %v796_v12 }
 0x1d5   :  { %v741_v54 = vmax.f32 %v739_v46, %v740_v50  ;;  %v800_v53 = vsel %vm799_vm11, %v788_v49, %v798_v52 }
 0x1d6   :  { %v734_v58 = vmax.f32 %v732_v48, %v733_v51 }
 0x1d7   :  { %v742_v55 = vrot.slane %v741_v54, 1 }
 0x1d8   :  { %v735_v59 = vrot.slane %v734_v58, 1 }
 0x1d9   :  { %v743_v60 = vmax.f32 %v741_v54, %v742_v55 }
 0x1da   :  { %v736_v61 = vmax.f32 %v734_v58, %v735_v59 }
 0x1db   :  { %v751_v62 = vpack.c.bf16 %v743_v60, %v743_v60 }
 0x1dc   :  { %v750_v63 = vpack.c.bf16 %v736_v61, %v736_v61 }
 0x1dd   :  { %v790_v57 = vunpack.c.l.b16 %v751_v62 }
 0x1de   :  { %v789_v3 = vunpack.c.l.b16 %v750_v63 }
 0x1e0   :  { %v802_v4 = vsel %vm801_vm12, %v789_v3, %v800_v53 }
 0x1e1   :  { %v804_v5 = vsel %vm803_vm13, %v790_v57, %v802_v4 }
 0x1e2   :  { %v805_v6 = vpack.c.b16 %v804_v5, %v804_v5 }
 0x1e4   :  { %1021 = vmatmul.mubr.bf16.vlgmr.msra.gmra.mrb[0].mxu1 %v805_v6 }
 0x2b7   :  { %v889_v2 = vpop.f32.mrb[0].mxu1 }
 0x2b8   :  { %v890_v7 = vadd.f32 %v938_v8, %v889_v2  ;;  %v1022_v9 = vpop.f32.mrb[1].mxu1 }
 0x2b9   :  { %v892_v10 = vpop.f32.mrb[2].mxu1 }
 0x2ba   :  { %895 = vst [vmem:[#allocation10] sm:$0xff] %v890_v7  ;;  %v1023_v11 = vpop.f32.mrb[3].mxu1 }
 0x2bb   :  { %1168 = shalt.err (!%p1165_p8)
}
 0x2bc   :  { %s1169_s5 = scalar_lea.hbm %s1511_s6, 128 }
 0x2bd   :  { %p1170_p9 = scmp.ne.s32.totalorder %s1511_s6, %s1169_s5  ;;  %p1173_p10 = scmp.lt.u32.totalorder %s1169_s5, %s1511_s6 }
 0x2bf   :  { %p1175_p11 = pnand %p1173_p10, %p1170_p9 }
 0x2c1   :  { %1178 = shalt.err (!%p1175_p11)
}
 0x2c2   :  { %905 = dma.vmem_to_hbm [thread:$0]  %s903_s27, 128, %s1511_s6, [#allocation4]  }
 0x2c3   :  { %1185 = dma.done.wait [#allocation4], 128  }
 0x2c4   :  { %1186 = vsyncadd [#allocation4], 4294967168 }
 0x2c5   :  { %909 = vsyncpa [#allocation3], 1 }
 0x2c6   :  { %910 = vsyncpa [#allocation6], 1 }
 0x2c7   :  { %911 = vsyncpa [#allocation9], 1 }
 0x2c8   :  { %912 = vsyncpa [#allocation4], 1 }

</bundles_post_ra>
